<compile_context>
chip_gen: v6e
topology: v6e:2x2x1
jax: 0.10.0
libtpu: 0.0.40
codegen_flags: <defaults>
</compile_context>

<pallas_src>
import functools

import jax
import jax.numpy as jnp
from jax.experimental import pallas as pl
from jax.experimental.pallas import tpu as pltpu


def _round_up(x, m):
    return ((x + m - 1) // m) * m


def _vmem_capacity_bytes():
    """Physical VMEM per core; conservative (v7x-sized) fallback if the query fails."""
    try:
        info = pltpu.get_tpu_info()
        for attr in ("vmem_capacity_bytes", "vmem_size_bytes", "vmem_bytes"):
            v = getattr(info, attr, None)
            if v:
                return int(v)
    except Exception:
        pass
    return 64 * 1024 * 1024


def _ldam_kernel(x_ref, tgt_ref, m_ref, w_ref, o_ref, *, s, n_rows):
    i = pl.program_id(0)
    tm = x_ref.shape[0]

    x = x_ref[...].astype(jnp.float32)                        # (tm, C)
    tgt = tgt_ref[...]                                        # (tm, 1) int32
    col = jax.lax.broadcasted_iota(jnp.int32, x.shape, 1)     # (tm, C)
    onehot = col == tgt                                       # (tm, C) bool

    m = m_ref[...]                                            # (1, C) f32 margins
    w = w_ref[...]                                            # (1, C) f32 class weights

    # Margin is subtracted only at the target logit, then scaled by s.
    logits = (x - jnp.where(onehot, m, 0.0)) * s              # (tm, C) f32

    # Numerically-stable per-row log-softmax cross entropy.
    row_max = jnp.max(logits, axis=-1, keepdims=True)                             # (tm, 1)
    lse = row_max + jnp.log(jnp.sum(jnp.exp(logits - row_max), axis=-1, keepdims=True))
    tgt_logit = jnp.sum(jnp.where(onehot, logits, 0.0), axis=-1, keepdims=True)   # (tm, 1)
    loss_i = lse - tgt_logit                                                      # (tm, 1)
    w_i = jnp.sum(jnp.where(onehot, w, 0.0), axis=-1, keepdims=True)              # (tm, 1)

    # Rows past the true batch size (trailing partial block) contribute nothing; the
    # select also keeps any garbage / NaN produced from padded-row data out of the sums.
    row = i * tm + jax.lax.broadcasted_iota(jnp.int32, (tm, 1), 0)
    valid = row < n_rows
    num = jnp.sum(jnp.where(valid, w_i * loss_i, 0.0))        # scalar partial numerator
    den = jnp.sum(jnp.where(valid, w_i, 0.0))                 # scalar partial denominator

    # Lane-dense (1, 8, 128) partial tile: sublane 0 = numerator, sublane 1 = denominator.
    sub = jax.lax.broadcasted_iota(jnp.int32, o_ref.shape, 1)
    o_ref[...] = jnp.where(sub == 0, num, jnp.where(sub == 1, den, 0.0))


def ldam_loss(x, target, m_list, *, s=30.0, weight=None, tm=None):
    """x: (N, C) logits (f32/bf16), target: (N,) int class ids, m_list: (C,) margins."""
    N, C = x.shape
    itemsize = jnp.dtype(x.dtype).itemsize
    sub = {4: 8, 2: 16, 1: 32}.get(itemsize, 8)       # sublane multiple for x's dtype
    c_lanes = _round_up(C, 128)                       # in-VMEM lane footprint of a row

    # Generation-aware VMEM budgeting (v7x: 64 MiB physical, v5e/v6e: 128 MiB).
    vmem_phys = _vmem_capacity_bytes()
    derive_budget = min(vmem_phys // 2, 80 * 1024 * 1024)
    vmem_limit = min((vmem_phys * 3) // 4, 100 * 1024 * 1024)

    if tm is None:
        # Double-buffered x block + f32 temporaries (conservative) + target block.
        per_row = c_lanes * (2 * itemsize + 12) + 2 * 128 * 4
        resident = 2 * 2 * 8 * c_lanes * 4 + (1 << 20)   # m, w, out blocks, slack
        tm = max((derive_budget - resident) // per_row, sub)
    tm = int(tm)
    tm = max((tm // sub) * sub, sub)
    tm = min(tm, 4096, _round_up(N, sub))
    grid = int(pl.cdiv(N, tm))

    tgt2 = target.astype(jnp.int32).reshape(N, 1)
    m2 = m_list.astype(jnp.float32).reshape(1, C)
    w_vec = jnp.ones((C,), jnp.float32) if weight is None else weight.astype(jnp.float32)
    w2 = w_vec.reshape(1, C)

    kernel = functools.partial(_ldam_kernel, s=float(s), n_rows=int(N))

    cost = pl.CostEstimate(
        flops=int(10 * N * C),
        transcendentals=int(N * (C + 1)),
        bytes_accessed=int(N * C * itemsize + N * 4 + 2 * C * 4 + grid * 8 * 128 * 4),
    )

    partials = pl.pallas_call(
        kernel,
        out_shape=jax.ShapeDtypeStruct((grid, 8, 128), jnp.float32),
        grid_spec=pltpu.PrefetchScalarGridSpec(
            num_scalar_prefetch=0,
            grid=(grid,),
            in_specs=[
                pl.BlockSpec((tm, C), lambda i: (i, 0)),   # logits rows, native dtype
                pl.BlockSpec((tm, 1), lambda i: (i, 0)),   # target column
                pl.BlockSpec((1, C), lambda i: (0, 0)),    # margins (resident)
                pl.BlockSpec((1, C), lambda i: (0, 0)),    # class weights (resident)
            ],
            out_specs=pl.BlockSpec((1, 8, 128), lambda i: (i, 0, 0)),   # per-step partials
        ),
        compiler_params=pltpu.CompilerParams(
            dimension_semantics=("parallel",),   # independent partials; both TCs on v7x
            vmem_limit_bytes=int(vmem_limit),
        ),
        cost_estimate=cost,
    )(x, tgt2, m2, w2)

    num = jnp.sum(partials[:, 0, 0])
    den = jnp.sum(partials[:, 1, 0])
    return num / den


def _make_m_list(cls_num_list, max_m):
    m = 1.0 / jnp.sqrt(jnp.sqrt(jnp.asarray(cls_num_list, dtype=jnp.float32)))
    return m * (max_m / jnp.max(m))


def _reference(x, target, m_list, s, weight):
    xf = x.astype(jnp.float32)
    onehot = jax.nn.one_hot(target, xf.shape[1], dtype=jnp.float32)
    batch_m = jnp.sum(onehot * m_list.astype(jnp.float32)[None, :], axis=-1, keepdims=True)
    output = jnp.where(onehot > 0, xf - batch_m, xf)
    logp = jax.nn.log_softmax(s * output, axis=-1)
    nll = -jnp.sum(onehot * logp, axis=-1)
    if weight is None:
        return jnp.mean(nll)
    w_i = weight.astype(jnp.float32)[target]
    return jnp.sum(w_i * nll) / jnp.sum(w_i)


if __name__ == "__main__":
    key = jax.random.PRNGKey(0)
    kx, kt, kx2, kt2, kx3, kt3, kw3 = jax.random.split(key, 7)
    max_m, s = 0.5, 30.0

    # 1) The PyTorch module hard-codes a (N, 2) one-hot => binary classification.
    batch, num_classes = 8, 2
    m_list = _make_m_list([100.0, 20.0], max_m)
    x = jax.random.normal(kx, (batch, num_classes), dtype=jnp.float32)
    target = jax.random.randint(kt, (batch,), 0, num_classes, dtype=jnp.int32)

    loss = jax.block_until_ready(ldam_loss(x, target, m_list, s=s, weight=None))
    ref = _reference(x, target, m_list, s, None)
    assert jnp.allclose(loss, ref, atol=1e-4, rtol=1e-4), (loss, ref)

    # 2) Weighted cross entropy (exercises the weighted-mean reduction).
    weight = jnp.array([1.0, 2.5], dtype=jnp.float32)
    loss_w = jax.block_until_ready(ldam_loss(x, target, m_list, s=s, weight=weight))
    ref_w = _reference(x, target, m_list, s, weight)
    assert jnp.allclose(loss_w, ref_w, atol=1e-4, rtol=1e-4), (loss_w, ref_w)

    # 3) Non-divisible batch: multi-step grid + trailing partial block masked in-kernel.
    batch2, num_classes2 = 37, 5
    m_list2 = _make_m_list([500.0, 120.0, 60.0, 30.0, 10.0], max_m)
    x2 = jax.random.normal(kx2, (batch2, num_classes2), dtype=jnp.float32)
    t2 = jax.random.randint(kt2, (batch2,), 0, num_classes2, dtype=jnp.int32)
    loss2 = jax.block_until_ready(ldam_loss(x2, t2, m_list2, s=s, weight=None, tm=16))
    ref2 = _reference(x2, t2, m_list2, s, None)
    assert jnp.allclose(loss2, ref2, atol=1e-4, rtol=1e-4), (loss2, ref2)

    # 4) Native bf16 ingest, odd class count, weighted, multi-step grid.
    batch3, num_classes3 = 96, 33
    m_list3 = _make_m_list(jnp.linspace(1000.0, 10.0, num_classes3), max_m)
    x3 = jax.random.normal(kx3, (batch3, num_classes3), dtype=jnp.float32).astype(jnp.bfloat16)
    t3 = jax.random.randint(kt3, (batch3,), 0, num_classes3, dtype=jnp.int32)
    w3 = jax.random.uniform(kw3, (num_classes3,), minval=0.5, maxval=2.0, dtype=jnp.float32)
    loss3 = jax.block_until_ready(ldam_loss(x3, t3, m_list3, s=s, weight=w3, tm=32))
    ref3 = _reference(x3, t3, m_list3, s, w3)
    assert jnp.allclose(loss3, ref3, atol=1e-3, rtol=1e-3), (loss3, ref3)

    print("KERNEL_OK")
</pallas_src>

<mosaic_0001>
module attributes {stable_mosaic.version = 11 : i64} {
  func.func @_ldam_kernel(%arg0: i32, %arg1: memref<8x2xf32, #tpu.memory_space<vmem>>, %arg2: memref<8x1xi32, #tpu.memory_space<vmem>>, %arg3: memref<1x2xf32, #tpu.memory_space<vmem>>, %arg4: memref<1x2xf32, #tpu.memory_space<vmem>>, %arg5: memref<1x8x128xf32, #tpu.memory_space<vmem>>) attributes {dimension_semantics = [#tpu.dimension_semantics<parallel>], iteration_bounds = array<i64: 1>, scalar_prefetch = 0 : i64, scratch_operands = 0 : i64, tpu.core_type = #tpu.core_type<tc>, window_params = [{transform_indices = @transform_0, window_bounds = array<i64: 8, 2>}, {transform_indices = @transform_1, window_bounds = array<i64: 8, 1>}, {pipeline_mode = #tpu.pipeline_mode<synchronous>, transform_indices = @transform_2, window_bounds = array<i64: 1, 2>}, {pipeline_mode = #tpu.pipeline_mode<synchronous>, transform_indices = @transform_3, window_bounds = array<i64: 1, 2>}, {transform_indices = @transform_4, window_bounds = array<i64: 1, 8, 128>}]} {
    %c0 = arith.constant 0 : index
    %c0_0 = arith.constant 0 : index
    %0 = vector.load %arg1[%c0, %c0_0] : memref<8x2xf32, #tpu.memory_space<vmem>>, vector<8x2xf32>
    %c0_1 = arith.constant 0 : index
    %c0_2 = arith.constant 0 : index
    %1 = vector.load %arg2[%c0_1, %c0_2] : memref<8x1xi32, #tpu.memory_space<vmem>>, vector<8x1xi32>
    %2 = tpu.iota {dimensions = array<i32: 1>} : vector<8x2xi32>
    %3 = vector.broadcast %1 : vector<8x1xi32> to vector<8x2xi32>
    %4 = arith.cmpi eq, %2, %3 : vector<8x2xi32>
    %c0_3 = arith.constant 0 : index
    %c0_4 = arith.constant 0 : index
    %5 = vector.load %arg3[%c0_3, %c0_4] : memref<1x2xf32, #tpu.memory_space<vmem>>, vector<1x2xf32>
    %c0_5 = arith.constant 0 : index
    %c0_6 = arith.constant 0 : index
    %6 = vector.load %arg4[%c0_5, %c0_6] : memref<1x2xf32, #tpu.memory_space<vmem>>, vector<1x2xf32>
    %cst = arith.constant 0.000000e+00 : f32
    %7 = vector.shape_cast %5 : vector<1x2xf32> to vector<1x2xf32>
    %8 = vector.broadcast %7 : vector<1x2xf32> to vector<8x2xf32>
    %9 = vector.broadcast %cst : f32 to vector<8x2xf32>
    %10 = arith.select %4, %8, %9 : vector<8x2xi1>, vector<8x2xf32>
    %11 = arith.subf %0, %10 : vector<8x2xf32>
    %cst_7 = arith.constant 3.000000e+01 : f32
    %12 = vector.broadcast %cst_7 : f32 to vector<8x2xf32>
    %13 = arith.mulf %11, %12 : vector<8x2xf32>
    %cst_8 = arith.constant dense<0xFF800000> : vector<8xf32>
    %14 = vector.multi_reduction <maximumf>, %13, %cst_8 [1] : vector<8x2xf32> to vector<8xf32>
    %15 = vector.shape_cast %14 : vector<8xf32> to vector<8x1xf32>
    %16 = vector.broadcast %15 : vector<8x1xf32> to vector<8x2xf32>
    %17 = arith.subf %13, %16 : vector<8x2xf32>
    %18 = math.exp %17 : vector<8x2xf32>
    %cst_9 = arith.constant dense<0.000000e+00> : vector<8xf32>
    %19 = vector.multi_reduction <add>, %18, %cst_9 [1] : vector<8x2xf32> to vector<8xf32>
    %20 = vector.shape_cast %19 : vector<8xf32> to vector<8x1xf32>
    %21 = math.log %20 : vector<8x1xf32>
    %22 = arith.addf %15, %21 : vector<8x1xf32>
    %cst_10 = arith.constant 0.000000e+00 : f32
    %23 = vector.broadcast %cst_10 : f32 to vector<8x2xf32>
    %24 = arith.select %4, %13, %23 : vector<8x2xi1>, vector<8x2xf32>
    %cst_11 = arith.constant dense<0.000000e+00> : vector<8xf32>
    %25 = vector.multi_reduction <add>, %24, %cst_11 [1] : vector<8x2xf32> to vector<8xf32>
    %26 = vector.shape_cast %25 : vector<8xf32> to vector<8x1xf32>
    %27 = arith.subf %22, %26 : vector<8x1xf32>
    %cst_12 = arith.constant 0.000000e+00 : f32
    %28 = vector.shape_cast %6 : vector<1x2xf32> to vector<1x2xf32>
    %29 = vector.broadcast %28 : vector<1x2xf32> to vector<8x2xf32>
    %30 = vector.broadcast %cst_12 : f32 to vector<8x2xf32>
    %31 = arith.select %4, %29, %30 : vector<8x2xi1>, vector<8x2xf32>
    %cst_13 = arith.constant dense<0.000000e+00> : vector<8xf32>
    %32 = vector.multi_reduction <add>, %31, %cst_13 [1] : vector<8x2xf32> to vector<8xf32>
    %33 = vector.shape_cast %32 : vector<8xf32> to vector<8x1xf32>
    %c8_i32 = arith.constant 8 : i32
    %34 = arith.muli %arg0, %c8_i32 : i32
    %35 = tpu.iota {dimensions = array<i32: 0>} : vector<8x1xi32>
    %36 = vector.broadcast %34 : i32 to vector<8x1xi32>
    %37 = arith.addi %36, %35 : vector<8x1xi32>
    %c8_i32_14 = arith.constant 8 : i32
    %38 = vector.broadcast %c8_i32_14 : i32 to vector<8x1xi32>
    %39 = arith.cmpi slt, %37, %38 : vector<8x1xi32>
    %40 = arith.mulf %33, %27 : vector<8x1xf32>
    %cst_15 = arith.constant 0.000000e+00 : f32
    %41 = vector.broadcast %cst_15 : f32 to vector<8x1xf32>
    %42 = arith.select %39, %40, %41 : vector<8x1xi1>, vector<8x1xf32>
    %43 = vector.shape_cast %42 : vector<8x1xf32> to vector<1x8x1xf32>
    %cst_16 = arith.constant dense<0.000000e+00> : vector<1xf32>
    %44 = vector.multi_reduction <add>, %43, %cst_16 [1, 2] : vector<1x8x1xf32> to vector<1xf32>
    %45 = vector.shape_cast %44 : vector<1xf32> to vector<1x1x1xf32>
    %46 = vector.extract %45[0, 0, 0] : f32 from vector<1x1x1xf32>
    %cst_17 = arith.constant 0.000000e+00 : f32
    %47 = vector.broadcast %cst_17 : f32 to vector<8x1xf32>
    %48 = arith.select %39, %33, %47 : vector<8x1xi1>, vector<8x1xf32>
    %49 = vector.shape_cast %48 : vector<8x1xf32> to vector<1x8x1xf32>
    %cst_18 = arith.constant dense<0.000000e+00> : vector<1xf32>
    %50 = vector.multi_reduction <add>, %49, %cst_18 [1, 2] : vector<1x8x1xf32> to vector<1xf32>
    %51 = vector.shape_cast %50 : vector<1xf32> to vector<1x1x1xf32>
    %52 = vector.extract %51[0, 0, 0] : f32 from vector<1x1x1xf32>
    %53 = tpu.iota {dimensions = array<i32: 1>} : vector<1x8x128xi32>
    %c0_i32 = arith.constant 0 : i32
    %54 = vector.broadcast %c0_i32 : i32 to vector<1x8x128xi32>
    %55 = arith.cmpi eq, %53, %54 : vector<1x8x128xi32>
    %c1_i32 = arith.constant 1 : i32
    %56 = vector.broadcast %c1_i32 : i32 to vector<1x8x128xi32>
    %57 = arith.cmpi eq, %53, %56 : vector<1x8x128xi32>
    %cst_19 = arith.constant 0.000000e+00 : f32
    %58 = vector.broadcast %52 : f32 to vector<1x8x128xf32>
    %59 = vector.broadcast %cst_19 : f32 to vector<1x8x128xf32>
    %60 = arith.select %57, %58, %59 : vector<1x8x128xi1>, vector<1x8x128xf32>
    %61 = vector.broadcast %46 : f32 to vector<1x8x128xf32>
    %62 = arith.select %55, %61, %60 : vector<1x8x128xi1>, vector<1x8x128xf32>
    %c0_20 = arith.constant 0 : index
    %c0_21 = arith.constant 0 : index
    %c0_22 = arith.constant 0 : index
    %63 = vector.load %arg5[%c0_20, %c0_21, %c0_22] : memref<1x8x128xf32, #tpu.memory_space<vmem>>, vector<1x8x128xf32>
    tpu.vector_store %arg5[%c0_20, %c0_21, %c0_22], %62 {strides = array<i32>} : memref<1x8x128xf32, #tpu.memory_space<vmem>>, vector<1x8x128xf32>,
    return
  }
  func.func @transform_0(%arg0: i32) -> (i32, i32) {
    %c0_i32 = arith.constant 0 : i32
    %c0_i32_0 = arith.constant 0 : i32
    return %arg0, %c0_i32 : i32, i32
  }
  func.func @transform_1(%arg0: i32) -> (i32, i32) {
    %c0_i32 = arith.constant 0 : i32
    %c0_i32_0 = arith.constant 0 : i32
    return %arg0, %c0_i32 : i32, i32
  }
  func.func @transform_2(%arg0: i32) -> (i32, i32) {
    %c0_i32 = arith.constant 0 : i32
    %c0_i32_0 = arith.constant 0 : i32
    %c0_i32_1 = arith.constant 0 : i32
    return %c0_i32, %c0_i32_0 : i32, i32
  }
  func.func @transform_3(%arg0: i32) -> (i32, i32) {
    %c0_i32 = arith.constant 0 : i32
    %c0_i32_0 = arith.constant 0 : i32
    %c0_i32_1 = arith.constant 0 : i32
    return %c0_i32, %c0_i32_0 : i32, i32
  }
  func.func @transform_4(%arg0: i32) -> (i32, i32, i32) {
    %c0_i32 = arith.constant 0 : i32
    %c0_i32_0 = arith.constant 0 : i32
    %c0_i32_1 = arith.constant 0 : i32
    return %arg0, %c0_i32, %c0_i32_0 : i32, i32, i32
  }
}

</mosaic_0001>

<bundles_post_ra>
// kernel: tpu_custom_call.1
= control target key start
LH: loop header
LB: loop body
LE: loop exit
PB: predicated region body
PF: predicated region fallthrough
CT: control target
= control target key end

     0   :  { %v151_v1 = vmov 0   ;;  %s196_s0 = inlined_call_operand.vmem [shape: f32[8,2], index: 0, kind: input, shape index: {}]   ;;  %s197_s1 = inlined_call_operand.vmem [shape: s32[8,1], index: 1, kind: input, shape index: {}]   ;;  %s198_s2 = inlined_call_operand.vmem [shape: f32[1,2], index: 2, kind: input, shape index: {}]   ;;  %s199_s3 = inlined_call_operand.vmem [shape: f32[1,2], index: 3, kind: input, shape index: {}]   ;;  %s200_s4 = inlined_call_operand.hbm [shape: f32[1,8,128], index: 4, kind: output, shape index: {}]  }
   0x1   :  { %v19_v0 = vld [vmem:[%s197_s1] sm:$0xff]  ;;  %124 = vset.pattern.permute.xlu0 %v151_v1 }
   0x2   :  { %9 = vsyncpa [#allocation3], 0  ;;  %23 = vperm.xlu0 %124, %v19_v0   ;;  %v20_v2 = vlaneseq  ;;  %v116_v4 = vld [vmem:[%s198_s2] ss:$0 sm:$0xff]  ;;  %vm37_vm1 = vcmask 15360   ;;  %vm73_vm2 = vcmask 7168  }
   0x3   :  { %v18_v6 = vld [vmem:[%s196_s0] sm:$0xff] }
   0x4   :  { %v21_v3 = vand.u32 127, %v20_v2  ;;  %v117_v17 = vld [vmem:[%s199_s3] ss:$0 sm:$0xff]  ;;  %v67_v45 = vshrl.u32 %v20_v2, 7  ;;  %s152_s3 = smov [#allocation2]  }
   0x5   :  { %s108_s21 = sshll.u32 %s152_s3, 4  ;;  %s109_s21 = int_to_ptr.vmem [resolvable:$true] %s108_s21 }
   0x6   :  { %vm96_vm3 = vcmp.eq.s32.totalorder %v67_v45, 1  ;;  %vm95_vm4 = vcmp.eq.s32.totalorder %v67_v45, 0  ;;  %s129_s23 = scalar_lea.vmem %s109_s21, 128  ;;  %p134_p1 = scmp.lt.s32.totalorder %s109_s21, %s109_s21 }
   0x7   :  { %p130_p0 = scmp.ne.s32.totalorder %s109_s21, %s129_s23  ;;  %p135_p2 = scmp.lt.s32.totalorder %s129_s23, %s129_s23 }
   0x9   :  { %p136_p3 = por %p135_p2, %p134_p1 }
   0xb   :  { %p137_p4 = pnand %p136_p3, %p130_p0 }
  0x7d   :  { %v24_v5 = vpop.permute.xlu0 %23 }
  0x7e   :  { %vm25_vm0 = vcmp.eq.s32.totalorder %v21_v3, %v24_v5 }
  0x7f   :  { %v34_v7 = vsel %vm25_vm0, %v116_v4, 0.0  ;;  %v61_v19 = vsel %vm25_vm0, %v117_v17, 0.0 }
  0x80   :  { %v35_v8 = vsub.f32 %v18_v6, %v34_v7  ;;  %v62_v20 = vsel %vm37_vm1, %v61_v19, 0.0 }
  0x82   :  { %v36_v9 = vmul.f32 30.0, %v35_v8 }
  0x84   :  { %v38_v10 = vsel %vm37_vm1, %v36_v9, -inf  ;;  %v50_v16 = vsel %vm25_vm0, %v36_v9, 0.0 }
  0x85   :  { %39 = vmax.xlane.f32.xlu0 %v38_v10  ;;  %v51_v18 = vsel %vm37_vm1, %v50_v16, 0.0 }
 0x10e   :  { %v40_v11 = vpop.xlane.xlu0 %39 }
 0x10f   :  { %v41_v12 = vsub.f32 %v36_v9, %v40_v11 }
 0x111   :  { %v42_v13 = vmul.f32 1.442695, %v41_v12 }
 0x113   :  { %125 = vpow2.f32 %v42_v13 }
 0x120   :  { %v126_v14 = vpop.eup %125 }
 0x121   :  { %v44_v15 = vsel %vm37_vm1, %v126_v14, 0.0 }
 0x122   :  { %45 = vadd.xlane.f32.xlu1 %v44_v15 }
 0x126   :  { %52 = vadd.xlane.f32.xlu1 %v51_v18 }
 0x12a   :  { %63 = vadd.xlane.f32.xlu1 %v62_v20 }
 0x1ab   :  { %v46_v21 = vpop.xlane.xlu1 %45 }
 0x1ac   :  { %127 = vlog2.f32 %v46_v21 }
 0x1af   :  { %v53_v23 = vpop.xlane.xlu1 %52 }
 0x1b3   :  { %v64_v27 = vpop.xlane.xlu1 %63 }
 0x1b4   :  { %v85_v30 = vsel %vm73_vm2, %v64_v27, 0.0 }
 0x1b9   :  { %v128_v22 = vpop.eup %127 }
 0x1ba   :  { %v48_v24 = vmul.f32 0.6931472, %v128_v22 }
 0x1bc   :  { %v49_v25 = vadd.f32 %v48_v24, %v40_v11 }
 0x1be   :  { %v54_v26 = vsub.f32 %v49_v25, %v53_v23 }
 0x1c0   :  { %v71_v28 = vmul.f32 %v64_v27, %v54_v26 }
 0x1c2   :  { %v74_v29 = vsel %vm73_vm2, %v71_v28, 0.0 }
 0x1c3   :  { %75 = vadd.xlane.f32.xlu1 %v74_v29 }
 0x1c7   :  { %86 = vadd.xlane.f32.xlu1 %v85_v30 }
 0x24c   :  { %v76_v31 = vpop.xlane.xlu1 %75 }
 0x24d   :  { %v77_v32 = vrot.slane %v76_v31, 4 }
 0x24f   :  { %v78_v33 = vadd.f32 %v77_v32, %v76_v31 }
 0x250   :  { %v87_v34 = vpop.xlane.xlu1 %86 }
 0x251   :  { %v79_v35 = vrot.slane %v78_v33, 2  ;;  %v88_v36 = vrot.slane %v87_v34, 4 }
 0x253   :  { %v89_v37 = vadd.f32 %v88_v36, %v87_v34  ;;  %v80_v38 = vadd.f32 %v79_v35, %v78_v33 }
 0x255   :  { %v90_v39 = vrot.slane %v89_v37, 2  ;;  %v81_v40 = vrot.slane %v80_v38, 1 }
 0x257   :  { %v91_v41 = vadd.f32 %v90_v39, %v89_v37  ;;  %v82_v42 = vadd.f32 %v81_v40, %v80_v38 }
 0x259   :  { %118 = vpush %v82_v42  ;;  %v92_v43 = vrot.slane %v91_v41, 1 }
 0x25b   :  { %v93_v44 = vadd.f32 %v92_v43, %v91_v41 }
 0x25d   :  { %120 = vpush %v93_v44 }
 0x28a   :  { %s119_s0 = spop %118 }
 0x28b   :  { %v99_v47 = vstv %s119_s0 }
 0x28e   :  { %s121_s22 = spop %120 }
 0x28f   :  { %v97_v46 = vstv %s121_s22 }
 0x290   :  { %v98_v48 = vsel %vm96_vm3, %v97_v46, 0.0 }
 0x291   :  { %v100_v49 = vsel %vm95_vm4, %v99_v47, %v98_v48 }
 0x292   :  { %101 = vst [vmem:[#allocation2] sm:$0xff] %v100_v49 }
 0x293   :  { %140 = shalt.err (!%p137_p4)
}
 0x294   :  { %111 = dma.vmem_to_hbm [thread:$0]  %s109_s21, 128, %s200_s4, [#allocation3]  }
 0x295   :  { %149 = dma.done.wait [#allocation3], 128  }
 0x296   :  { %150 = vsyncadd [#allocation3], 4294967168 }
 0x297   :  { %115 = vsyncpa [#allocation3], 1 }

</bundles_post_ra>
